<compile_context>
chip_gen: v7x
topology: tpu7x:2x2x1
jax: 0.10.0
libtpu: 0.0.40
codegen_flags: <defaults>
</compile_context>

<pallas_src>
import functools

import numpy as np
import jax
import jax.numpy as jnp
from jax import lax
from jax.experimental import pallas as pl
from jax.experimental.pallas import tpu as pltpu


# ---------------------------------------------------------------------------
# Pallas kernels
# ---------------------------------------------------------------------------

def _ddim_update_kernel(cxt_ref, ceps_ref, x_ref, eps_ref, o_ref):
    """Accelerated DDIM mean: x_prev = c_xt * x_t + c_eps * eps (eta == 0)."""
    o_ref[...] = cxt_ref[0] * x_ref[...] + ceps_ref[0] * eps_ref[...]
    # TODO(synk): eta != 0 stochastic term (+ sigma[i] * randn) not implemented.


def _ddim_update_finalize_kernel(cxt_ref, ceps_ref, x_ref, eps_ref, o_ref):
    """Last DDIM step fused with module epilogue: clip(-1, 1) * 0.5 + 0.5."""
    x0 = cxt_ref[0] * x_ref[...] + ceps_ref[0] * eps_ref[...]
    o_ref[...] = jnp.clip(x0, -1.0, 1.0) * 0.5 + 0.5


# ---------------------------------------------------------------------------
# Shape / tiling helpers
# ---------------------------------------------------------------------------

def _dense2d_shape(total, fallback):
    """View `total` contiguous elements as (rows, cols) with rows % 8 == 0 and
    cols % 128 == 0 when possible (full sublane/lane vreg utilization)."""
    if total % 128 != 0:
        return fallback
    best = None
    for cols in (32768, 16384, 8192, 4096, 2048, 1024, 512, 256, 128):
        if total % cols != 0:
            continue
        rows = total // cols
        if rows % 8 == 0:
            return (rows, cols)
        if best is None:
            best = (rows, cols)          # lane-dense, rows as full extent
    return best if best is not None else fallback


def _pick_block_n(n_rows, n_cols, bytes_per_elem=4, n_buffers=6,
                  vmem_budget=8 * 1024 * 1024):
    """Largest lane-dense block along the feature axis that fits the VMEM budget
    (3 arrays x double-buffer).  Falls back to the full width for ragged N."""
    max_cols = max(128, vmem_budget // max(1, n_rows * bytes_per_elem * n_buffers))
    for cand in (8192, 4096, 2048, 1024, 512, 256, 128):
        if cand <= max_cols and n_cols % cand == 0:
            return cand
    return n_cols


def _ddim_step_call(kernel, x_flat, eps_flat, coeff_xt, coeff_eps):
    """Run one elementwise DDIM-step kernel over (B, N) images, presented to
    the TPU as a sublane/lane-dense (R, C) slab."""
    B, N = x_flat.shape
    R, C = _dense2d_shape(B * N, (B, N))
    xk = x_flat.reshape(R, C)
    ek = eps_flat.reshape(R, C)
    block_c = _pick_block_n(R, C)
    data_spec = pl.BlockSpec((R, block_c), lambda i: (0, i))
    out = pl.pallas_call(
        kernel,
        out_shape=jax.ShapeDtypeStruct((R, C), jnp.float32),
        grid=(C // block_c,),
        in_specs=[
            pl.BlockSpec(memory_space=pltpu.MemorySpace.SMEM),  # coeff_xt
            pl.BlockSpec(memory_space=pltpu.MemorySpace.SMEM),  # coeff_eps
            data_spec,                                          # x_t
            data_spec,                                          # eps
        ],
        out_specs=data_spec,
        input_output_aliases={2: 0},                            # x_t buffer reused
        compiler_params=pltpu.CompilerParams(dimension_semantics=("parallel",)),
    )(coeff_xt, coeff_eps, xk, ek)
    return out.reshape(B, N)


ddim_update = functools.partial(_ddim_step_call, _ddim_update_kernel)
ddim_update_finalize = functools.partial(_ddim_step_call, _ddim_update_finalize_kernel)


# ---------------------------------------------------------------------------
# DDIM schedule precompute (host-side, mirrors GaussianDiffusionBase/DDIMSampler)
# ---------------------------------------------------------------------------

def space_timesteps(t, section_strides, section_counts=None):
    """Faithful port of DDIMSampler.space_timesteps (pure Python)."""
    size_per = t // len(section_strides)
    t_current = 1
    all_timesteps = [0, t_current]
    if section_counts is None:
        while True:
            t_current += section_strides[t_current // size_per]
            if t_current >= t:
                break
            all_timesteps.append(t_current)
    else:
        done = False
        for stride, count in zip(section_strides, section_counts):
            assert stride > 0, "section_strides must be positive"
            for _ in range(count):
                t_current += stride
                if t_current >= t:
                    done = True
                    break
                all_timesteps.append(t_current)
            if done or t_current >= t:
                break
        while t_current < t:
            t_current += section_strides[-1]
            if t_current >= t:
                break
            all_timesteps.append(t_current)
    return all_timesteps


def make_ddim_coefficients(timesteps, betas, eta=0.0):
    """Accelerated-path coefficients, identical math to the PyTorch constructor."""
    betas = np.asarray(betas, dtype=np.float64)
    alphas = 1.0 - betas
    alphas_cumprod = np.cumprod(alphas)
    alphas_cumprod_prev_full = np.concatenate([[1.0], alphas_cumprod[:-1]])

    ts_curr = np.asarray(timesteps[1:], dtype=np.int64)
    ts_prev = np.asarray(timesteps[:-1], dtype=np.int64)

    acp_curr = alphas_cumprod[ts_curr]
    acp_prev = alphas_cumprod_prev_full[ts_prev]
    alphas_ddim = acp_curr / acp_prev
    variance = (1.0 - alphas_ddim) * (1.0 - acp_prev) / (1.0 - acp_curr)
    sigma = eta * np.sqrt(variance)
    sigma_sq = (eta ** 2) * variance

    coeff_xt = np.sqrt(1.0 / alphas_ddim)
    coeff_eps = (-np.sqrt(1.0 - acp_curr) * np.sqrt(1.0 / alphas_ddim)
                 + np.sqrt(1.0 - acp_prev - sigma_sq))
    # TODO(synk): non-accelerated path (predict_x0 + clamp + q_mean_std) not implemented.
    return (ts_curr.astype(np.int32),
            coeff_xt.astype(np.float32),
            coeff_eps.astype(np.float32),
            sigma.astype(np.float32))


# ---------------------------------------------------------------------------
# Stand-in noise-prediction model (external dependency of DDIMSampler)
# ---------------------------------------------------------------------------

def toy_noise_model(x_flat, t):
    """Deterministic plain-JAX stand-in for the injected `model(x_t, t)`."""
    phase = t.astype(jnp.float32) * 0.05
    return jnp.tanh(0.3 * x_flat + jnp.sin(phase))


# ---------------------------------------------------------------------------
# DDIMSampler.forward (accelerate=True, eta=0)
# ---------------------------------------------------------------------------

def ddim_sample(x_T, ts_curr, coeff_xt_tab, coeff_eps_tab, model_fn):
    orig_shape = x_T.shape
    B = orig_shape[0]
    x = x_T.reshape(B, -1).astype(jnp.float32)
    n_steps = coeff_xt_tab.shape[0]

    def body(i, x):
        idx = n_steps - 1 - i                                   # reversed loop
        cxt = lax.dynamic_slice(coeff_xt_tab, (idx,), (1,))     # (1,) f32
        ceps = lax.dynamic_slice(coeff_eps_tab, (idx,), (1,))   # (1,) f32
        t_val = lax.dynamic_slice(ts_curr, (idx,), (1,))[0]     # scalar int32
        eps = model_fn(x, t_val)
        return ddim_update(x, eps, cxt, ceps)

    # All but the final (idx == 0) step.
    x = lax.fori_loop(0, n_steps - 1, body, x)

    # Final step fused with the module epilogue clip(-1, 1) * 0.5 + 0.5.
    eps = model_fn(x, ts_curr[0])
    out = ddim_update_finalize(x, eps, coeff_xt_tab[0:1], coeff_eps_tab[0:1])
    return out.reshape(orig_shape)


def ddim_sample_reference(x_T, ts_curr, coeff_xt_tab, coeff_eps_tab, model_fn):
    """Pure-jnp reference with identical math (no Pallas)."""
    B = x_T.shape[0]
    x = x_T.reshape(B, -1).astype(jnp.float32)
    n_steps = len(coeff_xt_tab)
    for i in reversed(range(n_steps)):
        eps = model_fn(x, jnp.asarray(ts_curr[i], dtype=jnp.int32))
        x = coeff_xt_tab[i] * x + coeff_eps_tab[i] * eps
    x = jnp.clip(x, -1.0, 1.0) * 0.5 + 0.5
    return x.reshape(x_T.shape)


# ---------------------------------------------------------------------------

if __name__ == "__main__":
    key = jax.random.PRNGKey(0)
    B, C, H, W = 2, 4, 16, 16
    T = 100

    timesteps = space_timesteps(T, [10, 15, 20, 25])      # e.g. [0,1,11,21,31,46,61,81]
    betas = np.linspace(1e-4, 0.02, T, dtype=np.float64)
    ts_curr, coeff_xt, coeff_eps, _sigma = make_ddim_coefficients(
        timesteps, betas, eta=0.0)

    x_T = jax.random.normal(key, (B, C, H, W), dtype=jnp.float32)

    ts_curr_j = jnp.asarray(ts_curr)
    coeff_xt_j = jnp.asarray(coeff_xt)
    coeff_eps_j = jnp.asarray(coeff_eps)

    sample_fn = jax.jit(functools.partial(ddim_sample, model_fn=toy_noise_model))
    out = jax.block_until_ready(sample_fn(x_T, ts_curr_j, coeff_xt_j, coeff_eps_j))

    ref = ddim_sample_reference(x_T, ts_curr, coeff_xt, coeff_eps, toy_noise_model)
    ref = jax.block_until_ready(ref)

    assert out.shape == (B, C, H, W)
    assert jnp.allclose(out, ref, atol=1e-5, rtol=1e-5), "mismatch vs reference"

    print("KERNEL_OK")
</pallas_src>

<mosaic_0001>
module attributes {stable_mosaic.version = 11 : i64} {
  func.func @_ddim_update_kernel(%arg0: i32, %arg1: memref<1xf32, #tpu.memory_space<smem>>, %arg2: memref<1xf32, #tpu.memory_space<smem>>, %arg3: memref<8x256xf32, #tpu.memory_space<vmem>>, %arg4: memref<8x256xf32, #tpu.memory_space<vmem>>, %arg5: memref<8x256xf32, #tpu.memory_space<vmem>>) attributes {dimension_semantics = [#tpu.dimension_semantics<parallel>], iteration_bounds = array<i64: 1>, scalar_prefetch = 0 : i64, scratch_operands = 0 : i64, tpu.core_type = #tpu.core_type<tc>, window_params = [{transform_indices = @transform_0, window_bounds = array<i64: 1>}, {transform_indices = @transform_1, window_bounds = array<i64: 1>}, {transform_indices = @transform_2, window_bounds = array<i64: 8, 256>}, {transform_indices = @transform_3, window_bounds = array<i64: 8, 256>}, {transform_indices = @transform_4, window_bounds = array<i64: 8, 256>}]} {
    %c0 = arith.constant 0 : index
    %0 = memref.load %arg1[%c0] : memref<1xf32, #tpu.memory_space<smem>>
    %c0_0 = arith.constant 0 : index
    %c0_1 = arith.constant 0 : index
    %1 = vector.load %arg3[%c0_0, %c0_1] : memref<8x256xf32, #tpu.memory_space<vmem>>, vector<8x256xf32>
    %2 = vector.broadcast %0 : f32 to vector<8x256xf32>
    %3 = arith.mulf %2, %1 : vector<8x256xf32>
    %c0_2 = arith.constant 0 : index
    %4 = memref.load %arg2[%c0_2] : memref<1xf32, #tpu.memory_space<smem>>
    %c0_3 = arith.constant 0 : index
    %c0_4 = arith.constant 0 : index
    %5 = vector.load %arg4[%c0_3, %c0_4] : memref<8x256xf32, #tpu.memory_space<vmem>>, vector<8x256xf32>
    %6 = vector.broadcast %4 : f32 to vector<8x256xf32>
    %7 = arith.mulf %6, %5 : vector<8x256xf32>
    %8 = arith.addf %3, %7 : vector<8x256xf32>
    %c0_5 = arith.constant 0 : index
    %c0_6 = arith.constant 0 : index
    %9 = vector.load %arg5[%c0_5, %c0_6] : memref<8x256xf32, #tpu.memory_space<vmem>>, vector<8x256xf32>
    tpu.vector_store %arg5[%c0_5, %c0_6], %8 {strides = array<i32>} : memref<8x256xf32, #tpu.memory_space<vmem>>, vector<8x256xf32>,
    return
  }
  func.func @transform_0(%arg0: i32) -> i32 {
    %c0_i32 = arith.constant 0 : i32
    %c0_i32_0 = arith.constant 0 : i32
    return %c0_i32 : i32
  }
  func.func @transform_1(%arg0: i32) -> i32 {
    %c0_i32 = arith.constant 0 : i32
    %c0_i32_0 = arith.constant 0 : i32
    return %c0_i32 : i32
  }
  func.func @transform_2(%arg0: i32) -> (i32, i32) {
    %c0_i32 = arith.constant 0 : i32
    %c0_i32_0 = arith.constant 0 : i32
    return %c0_i32, %arg0 : i32, i32
  }
  func.func @transform_3(%arg0: i32) -> (i32, i32) {
    %c0_i32 = arith.constant 0 : i32
    %c0_i32_0 = arith.constant 0 : i32
    return %c0_i32, %arg0 : i32, i32
  }
  func.func @transform_4(%arg0: i32) -> (i32, i32) {
    %c0_i32 = arith.constant 0 : i32
    %c0_i32_0 = arith.constant 0 : i32
    return %c0_i32, %arg0 : i32, i32
  }
}

module attributes {stable_mosaic.version = 11 : i64} {
  func.func @_ddim_update_finalize_kernel(%arg0: i32, %arg1: memref<1xf32, #tpu.memory_space<smem>>, %arg2: memref<1xf32, #tpu.memory_space<smem>>, %arg3: memref<8x256xf32, #tpu.memory_space<vmem>>, %arg4: memref<8x256xf32, #tpu.memory_space<vmem>>, %arg5: memref<8x256xf32, #tpu.memory_space<vmem>>) attributes {dimension_semantics = [#tpu.dimension_semantics<parallel>], iteration_bounds = array<i64: 1>, scalar_prefetch = 0 : i64, scratch_operands = 0 : i64, tpu.core_type = #tpu.core_type<tc>, window_params = [{transform_indices = @transform_0, window_bounds = array<i64: 1>}, {transform_indices = @transform_1, window_bounds = array<i64: 1>}, {transform_indices = @transform_2, window_bounds = array<i64: 8, 256>}, {transform_indices = @transform_3, window_bounds = array<i64: 8, 256>}, {transform_indices = @transform_4, window_bounds = array<i64: 8, 256>}]} {
    %c0 = arith.constant 0 : index
    %0 = memref.load %arg1[%c0] : memref<1xf32, #tpu.memory_space<smem>>
    %c0_0 = arith.constant 0 : index
    %c0_1 = arith.constant 0 : index
    %1 = vector.load %arg3[%c0_0, %c0_1] : memref<8x256xf32, #tpu.memory_space<vmem>>, vector<8x256xf32>
    %2 = vector.broadcast %0 : f32 to vector<8x256xf32>
    %3 = arith.mulf %2, %1 : vector<8x256xf32>
    %c0_2 = arith.constant 0 : index
    %4 = memref.load %arg2[%c0_2] : memref<1xf32, #tpu.memory_space<smem>>
    %c0_3 = arith.constant 0 : index
    %c0_4 = arith.constant 0 : index
    %5 = vector.load %arg4[%c0_3, %c0_4] : memref<8x256xf32, #tpu.memory_space<vmem>>, vector<8x256xf32>
    %6 = vector.broadcast %4 : f32 to vector<8x256xf32>
    %7 = arith.mulf %6, %5 : vector<8x256xf32>
    %8 = arith.addf %3, %7 : vector<8x256xf32>
    %cst = arith.constant -1.000000e+00 : f32
    %cst_5 = arith.constant 1.000000e+00 : f32
    %9 = vector.broadcast %cst : f32 to vector<8x256xf32>
    %10 = arith.maximumf %9, %8 : vector<8x256xf32>
    %11 = vector.broadcast %cst_5 : f32 to vector<8x256xf32>
    %12 = arith.minimumf %11, %10 : vector<8x256xf32>
    %cst_6 = arith.constant 5.000000e-01 : f32
    %13 = vector.broadcast %cst_6 : f32 to vector<8x256xf32>
    %14 = arith.mulf %12, %13 : vector<8x256xf32>
    %cst_7 = arith.constant 5.000000e-01 : f32
    %15 = vector.broadcast %cst_7 : f32 to vector<8x256xf32>
    %16 = arith.addf %14, %15 : vector<8x256xf32>
    %c0_8 = arith.constant 0 : index
    %c0_9 = arith.constant 0 : index
    %17 = vector.load %arg5[%c0_8, %c0_9] : memref<8x256xf32, #tpu.memory_space<vmem>>, vector<8x256xf32>
    tpu.vector_store %arg5[%c0_8, %c0_9], %16 {strides = array<i32>} : memref<8x256xf32, #tpu.memory_space<vmem>>, vector<8x256xf32>,
    return
  }
  func.func @transform_0(%arg0: i32) -> i32 {
    %c0_i32 = arith.constant 0 : i32
    %c0_i32_0 = arith.constant 0 : i32
    return %c0_i32 : i32
  }
  func.func @transform_1(%arg0: i32) -> i32 {
    %c0_i32 = arith.constant 0 : i32
    %c0_i32_0 = arith.constant 0 : i32
    return %c0_i32 : i32
  }
  func.func @transform_2(%arg0: i32) -> (i32, i32) {
    %c0_i32 = arith.constant 0 : i32
    %c0_i32_0 = arith.constant 0 : i32
    return %c0_i32, %arg0 : i32, i32
  }
  func.func @transform_3(%arg0: i32) -> (i32, i32) {
    %c0_i32 = arith.constant 0 : i32
    %c0_i32_0 = arith.constant 0 : i32
    return %c0_i32, %arg0 : i32, i32
  }
  func.func @transform_4(%arg0: i32) -> (i32, i32) {
    %c0_i32 = arith.constant 0 : i32
    %c0_i32_0 = arith.constant 0 : i32
    return %c0_i32, %arg0 : i32, i32
  }
}

</mosaic_0001>

<bundles_post_ra>
// kernel: ddim_sample.1
= control target key start
LH: loop header
LB: loop body
LE: loop exit
PB: predicated region body
PF: predicated region fallthrough
CT: control target
= control target key end

     0   :  { %s98_s0 = inlined_call_operand.<no memory space> [shape: f32[1], index: 0, kind: input, shape index: {}]   ;;  %s99_s1 = inlined_call_operand.<no memory space> [shape: f32[1], index: 1, kind: input, shape index: {}]   ;;  %s100_s2 = inlined_call_operand.vmem [shape: f32[8,256], index: 2, kind: input, shape index: {}, may-alias: {2,4}]   ;;  %s101_s3 = inlined_call_operand.vmem [shape: f32[8,256], index: 3, kind: input, shape index: {}]   ;;  %s102_s4 = inlined_call_operand.vmem [shape: f32[8,256], index: 4, kind: output, shape index: {}, may-alias: {2,4}]  }
   0x1   :  { %v20_v0 = vld [vmem:[%s100_s2] sm:$0xff]  ;;  %v22_v1 = vstv %s98_s0  ;;  %v28_v3 = vstv %s99_s1  ;;  %v21_v6 = vld [vmem:[%s100_s2 + $0x8] sm:$0xff] }
   0x2   :  { %v26_v2 = vld [vmem:[%s101_s3] sm:$0xff]  ;;  %v23_v4 = vmul.f32 %v22_v1, %v20_v0  ;;  %v27_v7 = vld [vmem:[%s101_s3 + $0x8] sm:$0xff]  ;;  %v24_v8 = vmul.f32 %v22_v1, %v21_v6 }
   0x3   :  { %v29_v5 = vmul.f32 %v28_v3, %v26_v2  ;;  %v30_v9 = vmul.f32 %v28_v3, %v27_v7 }
   0x5   :  { %v31_v10 = vadd.f32 %v29_v5, %v23_v4  ;;  %v32_v11 = vadd.f32 %v30_v9, %v24_v8 }
   0x7   :  { %v47_v12 = vclamps-f32 %v31_v10, 1.0  ;;  %v48_v13 = vclamps-f32 %v32_v11, 1.0 }
   0x9   :  { %v37_v14 = vmul.f32 0.5, %v47_v12  ;;  %v38_v15 = vmul.f32 0.5, %v48_v13 }
   0xb   :  { %v39_v16 = vadd.f32 0.5, %v37_v14  ;;  %v40_v17 = vadd.f32 0.5, %v38_v15 }
   0xd   :  { %41 = vst [vmem:[%s102_s4] sm:$0xff] %v39_v16  ;;  %42 = vst [vmem:[%s102_s4 + $0x8] sm:$0xff] %v40_v17 }

// kernel: closed_call.13
= control target key start
LH: loop header
LB: loop body
LE: loop exit
PB: predicated region body
PF: predicated region fallthrough
CT: control target
= control target key end

     0   :  { %s88_s0 = inlined_call_operand.<no memory space> [shape: f32[1], index: 0, kind: input, shape index: {}]   ;;  %s89_s1 = inlined_call_operand.<no memory space> [shape: f32[1], index: 1, kind: input, shape index: {}]   ;;  %s90_s2 = inlined_call_operand.vmem [shape: f32[8,256], index: 2, kind: input, shape index: {}, may-alias: {2,4}]   ;;  %s91_s3 = inlined_call_operand.vmem [shape: f32[8,256], index: 3, kind: input, shape index: {}]   ;;  %s92_s4 = inlined_call_operand.vmem [shape: f32[8,256], index: 4, kind: output, shape index: {}, may-alias: {2,4}]  }
   0x1   :  { %v20_v0 = vld [vmem:[%s90_s2] sm:$0xff]  ;;  %v22_v1 = vstv %s88_s0  ;;  %v28_v3 = vstv %s89_s1  ;;  %v21_v6 = vld [vmem:[%s90_s2 + $0x8] sm:$0xff] }
   0x2   :  { %v26_v2 = vld [vmem:[%s91_s3] sm:$0xff]  ;;  %v23_v4 = vmul.f32 %v22_v1, %v20_v0  ;;  %v27_v7 = vld [vmem:[%s91_s3 + $0x8] sm:$0xff]  ;;  %v24_v8 = vmul.f32 %v22_v1, %v21_v6 }
   0x3   :  { %v29_v5 = vmul.f32 %v28_v3, %v26_v2  ;;  %v30_v9 = vmul.f32 %v28_v3, %v27_v7 }
   0x5   :  { %v31_v10 = vadd.f32 %v29_v5, %v23_v4  ;;  %v32_v11 = vadd.f32 %v30_v9, %v24_v8 }
   0x7   :  { %33 = vst [vmem:[%s92_s4] sm:$0xff] %v31_v10  ;;  %34 = vst [vmem:[%s92_s4 + $0x8] sm:$0xff] %v32_v11 }

</bundles_post_ra>
